<compile_context>
chip_gen: v7x
topology: tpu7x:2x2x1
jax: 0.10.0
libtpu: 0.0.40
codegen_flags: <defaults>
</compile_context>

<pallas_src>
import functools

import jax
import jax.numpy as jnp
import numpy as np
from jax.experimental import pallas as pl
from jax.experimental.pallas import tpu as pltpu

jax.config.update("jax_default_matmul_precision", "float32")

HEAD_PAD = 128  # lane-dense classifier output width


# ----------------------------------------------------------------------------
# Hardware-aware knobs (probed once, cached)
# ----------------------------------------------------------------------------


@functools.lru_cache(maxsize=1)
def _vmem_limit_bytes():
    """~75% of per-core VMEM: ~96 MiB on v5e/v6e (128 MiB), ~48 MiB on v7x (64 MiB)."""
    cap = 64 * 1024 * 1024
    try:
        cap = int(pltpu.get_tpu_info().vmem_capacity_bytes)
    except Exception:
        pass
    return max(32 * 1024 * 1024, min(cap * 3 // 4, 112 * 1024 * 1024))


def _probe_copy_kernel(x_ref, o_ref):
    o_ref[...] = x_ref[...]


@functools.lru_cache(maxsize=1)
def _resident_mode():
    """pl.Buffered(1) if single-buffering of grid-invariant operands is supported."""
    try:
        f = pl.pallas_call(
            _probe_copy_kernel,
            grid=(2,),
            in_specs=[pl.BlockSpec((8, 128), lambda i: (0, 0),
                                   pipeline_mode=pl.Buffered(1))],
            out_specs=pl.BlockSpec((8, 128), lambda i: (i, 0)),
            out_shape=jax.ShapeDtypeStruct((16, 128), jnp.float32),
        )
        jax.block_until_ready(f(jnp.zeros((8, 128), jnp.float32)))
        return pl.Buffered(1)
    except Exception:
        return None


def _resident_spec(shape):
    """BlockSpec for a grid-invariant operand on a 1-D grid (single-buffered if possible)."""
    mode = _resident_mode()
    index_map = lambda i: (0,) * len(shape)  # noqa: E731
    if mode is not None:
        return pl.BlockSpec(shape, index_map, pipeline_mode=mode)
    return pl.BlockSpec(shape, index_map)


def _compiler_params(n_axes=1):
    return pltpu.CompilerParams(
        dimension_semantics=("parallel",) * n_axes,
        vmem_limit_bytes=_vmem_limit_bytes(),
    )


def _pick_tm(M):
    """Largest row tile (multiple of 8) that divides M; else the full M."""
    if M % 8 != 0:
        return M
    for t in (1024, 512, 256, 128, 64, 32, 16, 8):
        if M % t == 0:
            return t
    return M


# ----------------------------------------------------------------------------
# In-kernel math helpers (f32)
# ----------------------------------------------------------------------------


def _gelu_tanh_f32(y):
    # TODO(synk): HF BERT default is the exact erf-GELU; tanh approximation used here.
    return 0.5 * y * (1.0 + jnp.tanh(0.7978845608028654 *
                                     (y + 0.044715 * y * y * y)))


def _ln_f32(y, g, b, eps):
    mu = jnp.mean(y, axis=-1, keepdims=True)
    yc = y - mu
    var = jnp.mean(yc * yc, axis=-1, keepdims=True)
    return yc * jax.lax.rsqrt(var + eps) * g + b


def _mm(x_bf16, w_bf16):
    return jnp.dot(x_bf16, w_bf16, preferred_element_type=jnp.float32)


# ----------------------------------------------------------------------------
# Pallas kernels
# ----------------------------------------------------------------------------


def _dense_kernel(x_ref, w_ref, b_ref, o_ref, *, activation):
    """o = act(x @ w + b). Weights are bf16 and resident across row tiles."""
    y = _mm(x_ref[...].astype(jnp.bfloat16), w_ref[...]) + b_ref[...]
    if activation == "tanh":
        y = jnp.tanh(y)
    o_ref[...] = y


def dense(x, w, b, activation=None):
    M, K = x.shape
    N = w.shape[1]
    tm = _pick_tm(M)
    return pl.pallas_call(
        functools.partial(_dense_kernel, activation=activation),
        grid=(M // tm,),
        in_specs=[
            pl.BlockSpec((tm, K), lambda i: (i, 0)),
            _resident_spec((K, N)),
            _resident_spec((1, N)),
        ],
        out_specs=pl.BlockSpec((tm, N), lambda i: (i, 0)),
        out_shape=jax.ShapeDtypeStruct((M, N), jnp.float32),
        compiler_params=_compiler_params(1),
    )(x, w, b.reshape(1, N))


def _emb_ln_kernel(word_ref, typ_ref, pos_ref, g_ref, b_ref, o_ref, *, eps):
    """o = LayerNorm(word + type + pos) — embedding sum fused into the LN kernel."""
    x = word_ref[0] + typ_ref[0] + pos_ref[...]
    o_ref[0] = _ln_f32(x, g_ref[...], b_ref[...], eps)


def embed_layernorm(word, typ, pos, g, b, eps=1e-12):
    B, S, H = word.shape
    return pl.pallas_call(
        functools.partial(_emb_ln_kernel, eps=eps),
        grid=(B,),
        in_specs=[
            pl.BlockSpec((1, S, H), lambda i: (i, 0, 0)),
            pl.BlockSpec((1, S, H), lambda i: (i, 0, 0)),
            _resident_spec((S, H)),
            _resident_spec((1, H)),
            _resident_spec((1, H)),
        ],
        out_specs=pl.BlockSpec((1, S, H), lambda i: (i, 0, 0)),
        out_shape=jax.ShapeDtypeStruct((B, S, H), jnp.float32),
        compiler_params=_compiler_params(1),
    )(word, typ, pos, g.reshape(1, H), b.reshape(1, H))


def _layer_kernel(x_ref, mask_ref, qkv_w_ref, qkv_b_ref, ao_w_ref, ao_b_ref,
                  ln1_g_ref, ln1_b_ref, fi_w_ref, fi_b_ref, fo_w_ref, fo_b_ref,
                  ln2_g_ref, ln2_b_ref, o_ref, *, num_heads, head_dim, scale, eps):
    """One full transformer layer for one batch row; intermediates stay in VMEM."""
    H = num_heads * head_dim
    x = x_ref[0]                          # (S, H) f32 residual stream
    mask = mask_ref[0]                    # (1, S) additive key mask

    # ---- fused QKV projection (bf16 resident weights, f32 accumulation) ----
    qkv = _mm(x.astype(jnp.bfloat16), qkv_w_ref[...]) + qkv_b_ref[...]   # (S, 3H)

    # ---- multi-head self-attention; softmax scale folded into Q ----
    q_all = (qkv[:, :H] * scale).astype(jnp.bfloat16)
    ctxs = []
    for h in range(num_heads):
        lo, hi = h * head_dim, (h + 1) * head_dim
        q = q_all[:, lo:hi]
        k = qkv[:, H + lo:H + hi].astype(jnp.bfloat16)
        v = qkv[:, 2 * H + lo:2 * H + hi].astype(jnp.bfloat16)
        s = jax.lax.dot_general(q, k, (((1,), (1,)), ((), ())),
                                preferred_element_type=jnp.float32) + mask
        s = s - jnp.max(s, axis=-1, keepdims=True)
        p = jnp.exp(s)
        p = p * pl.reciprocal(jnp.sum(p, axis=-1, keepdims=True), approx=True)
        ctxs.append(_mm(p.astype(jnp.bfloat16), v))
    # single lane-dense (S, H) context (one concat, unmasked stores downstream)
    ctx = jnp.concatenate(ctxs, axis=-1).astype(jnp.bfloat16)

    # ---- attention-output dense + residual + LayerNorm ----
    ao = _mm(ctx, ao_w_ref[...]) + ao_b_ref[...] + x
    h1 = _ln_f32(ao, ln1_g_ref[...], ln1_b_ref[...], eps)

    # ---- FFN: dense -> GELU -> dense -> residual -> LayerNorm (intermediate in VMEM) ----
    mid = _mm(h1.astype(jnp.bfloat16), fi_w_ref[...]) + fi_b_ref[...]
    mid = _gelu_tanh_f32(mid)
    ff = _mm(mid.astype(jnp.bfloat16), fo_w_ref[...]) + fo_b_ref[...] + h1
    o_ref[0] = _ln_f32(ff, ln2_g_ref[...], ln2_b_ref[...], eps)


def layer_block(x, add_mask, lp, *, num_heads, eps=1e-12):
    B, S, H = x.shape
    D = H // num_heads
    I = lp["fi_w"].shape[1]
    scale = 1.0 / float(np.sqrt(D))
    return pl.pallas_call(
        functools.partial(_layer_kernel, num_heads=num_heads, head_dim=D,
                          scale=scale, eps=eps),
        grid=(B,),
        in_specs=[
            pl.BlockSpec((1, S, H), lambda b: (b, 0, 0)),
            pl.BlockSpec((1, 1, S), lambda b: (b, 0, 0)),
            _resident_spec((H, 3 * H)),   # qkv_w  (bf16)
            _resident_spec((1, 3 * H)),   # qkv_b
            _resident_spec((H, H)),       # ao_w   (bf16)
            _resident_spec((1, H)),       # ao_b
            _resident_spec((1, H)),       # ln1_g
            _resident_spec((1, H)),       # ln1_b
            _resident_spec((H, I)),       # fi_w   (bf16)
            _resident_spec((1, I)),       # fi_b
            _resident_spec((I, H)),       # fo_w   (bf16)
            _resident_spec((1, H)),       # fo_b
            _resident_spec((1, H)),       # ln2_g
            _resident_spec((1, H)),       # ln2_b
        ],
        out_specs=pl.BlockSpec((1, S, H), lambda b: (b, 0, 0)),
        out_shape=jax.ShapeDtypeStruct((B, S, H), jnp.float32),
        compiler_params=_compiler_params(1),
    )(x, add_mask,
      lp["qkv_w"], lp["qkv_b"].reshape(1, -1),
      lp["ao_w"], lp["ao_b"].reshape(1, -1),
      lp["ln1_g"].reshape(1, -1), lp["ln1_b"].reshape(1, -1),
      lp["fi_w"], lp["fi_b"].reshape(1, -1),
      lp["fo_w"], lp["fo_b"].reshape(1, -1),
      lp["ln2_g"].reshape(1, -1), lp["ln2_b"].reshape(1, -1))


# ----------------------------------------------------------------------------
# Model (parameters + forward)
# ----------------------------------------------------------------------------


def init_params(key, *, vocab, types, maxpos, H, I, L):
    keys = iter(jax.random.split(key, 16 + 8 * L))

    def nrm(shape):
        return (0.02 * jax.random.normal(next(keys), shape)).astype(jnp.float32)

    def nrm_bf16(shape):
        return nrm(shape).astype(jnp.bfloat16)

    def zeros(shape):
        return jnp.zeros(shape, jnp.float32)

    def ones(shape):
        return jnp.ones(shape, jnp.float32)

    # merged classifier heads (lane-dense 128 columns):
    #   cols [0:8] -> classifier_conds_op, col 8 -> classifier_conds_col,
    #   col 9 -> classifier_sel_col, rest zero padding.
    op_w, cc_w, sc_w = nrm((H, 8)), nrm((H, 1)), nrm((H, 1))
    head_w = jnp.concatenate(
        [op_w, cc_w, sc_w, jnp.zeros((H, HEAD_PAD - 10), jnp.float32)],
        axis=1).astype(jnp.bfloat16)
    head_b = jnp.zeros((HEAD_PAD,), jnp.float32)

    p = {
        "word_emb": nrm((vocab, H)),
        "pos_emb": nrm((maxpos, H)),
        "type_emb": nrm((types, H)),
        "emb_ln_g": ones((H,)),
        "emb_ln_b": zeros((H,)),
        "pool_w": nrm_bf16((H, H)),
        "pool_b": zeros((H,)),
        "head_w": head_w,
        "head_b": head_b,
        "layers": [],
    }
    for _ in range(L):
        p["layers"].append(
            {
                "qkv_w": nrm_bf16((H, 3 * H)), "qkv_b": zeros((3 * H,)),
                "ao_w": nrm_bf16((H, H)), "ao_b": zeros((H,)),
                "ln1_g": ones((H,)), "ln1_b": zeros((H,)),
                "fi_w": nrm_bf16((H, I)), "fi_b": zeros((I,)),
                "fo_w": nrm_bf16((I, H)), "fo_b": zeros((H,)),
                "ln2_g": ones((H,)), "ln2_b": zeros((H,)),
            }
        )
    return p


def bert1_forward(params, input_ids, attention_mask, token_type_ids, index,
                  *, num_heads):
    B, S = input_ids.shape
    H = params["word_emb"].shape[1]

    # ---- embeddings: gathers are XLA glue; sum + LayerNorm fused in one kernel ----
    word = params["word_emb"][input_ids]            # (B, S, H)
    typ = params["type_emb"][token_type_ids]        # (B, S, H)
    pos = params["pos_emb"][:S]                     # (S, H)
    h = embed_layernorm(word, typ, pos, params["emb_ln_g"], params["emb_ln_b"])

    # additive attention mask, (B, 1, S)
    add_mask = ((1.0 - attention_mask.astype(jnp.float32)) * -10000.0).reshape(B, 1, S)

    # ---- transformer layers: ONE fused pallas_call per layer ----
    for lp in params["layers"]:
        h = layer_block(h, add_mask, lp, num_heads=num_heads)

    # ---- pooler: tanh(W * last_hidden[:, 0]) ----
    pooled = dense(h[:, 0, :], params["pool_w"], params["pool_b"],
                   activation="tanh")                               # (B, H)

    # nn.Dropout(0.1) is identity at inference time.

    # ---- merged classifier heads: one lane-dense (H, 128) dense over stacked rows ----
    cls_cols = jnp.take(h, index, axis=1)                           # (B, C, H)
    C = index.shape[0]
    head_in = jnp.concatenate([pooled, cls_cols.reshape(B * C, H)], axis=0)
    head_out = dense(head_in, params["head_w"], params["head_b"])   # (B + B*C, 128)

    out_conds_op = head_out[:B, :8]                                 # (B, 8)
    out_conds_col = head_out[B:, 8].reshape(B, C)                   # (B, C)
    out_sel_col = head_out[B:, 9].reshape(B, C)                     # (B, C)
    return out_sel_col, out_conds_col, out_conds_op


# ----------------------------------------------------------------------------
# Pure-JAX reference (f32 math over the same bf16-rounded weights)
# ----------------------------------------------------------------------------


def _ln_ref(x, g, b, eps=1e-12):
    mu = x.mean(-1, keepdims=True)
    xc = x - mu
    var = (xc * xc).mean(-1, keepdims=True)
    return xc * jax.lax.rsqrt(var + eps) * g + b


def reference_forward(p, input_ids, attention_mask, token_type_ids, index,
                      *, num_heads):
    f32 = lambda a: a.astype(jnp.float32)  # noqa: E731
    B, S = input_ids.shape
    H = p["word_emb"].shape[1]
    D = H // num_heads
    e = p["word_emb"][input_ids] + p["pos_emb"][:S][None] + p["type_emb"][token_type_ids]
    h = _ln_ref(e, p["emb_ln_g"], p["emb_ln_b"])
    mask = (1.0 - attention_mask.astype(jnp.float32)) * -10000.0
    for lp in p["layers"]:
        qkv = h @ f32(lp["qkv_w"]) + lp["qkv_b"]
        q = qkv[..., :H].reshape(B, S, num_heads, D).transpose(0, 2, 1, 3)
        k = qkv[..., H:2 * H].reshape(B, S, num_heads, D).transpose(0, 2, 1, 3)
        v = qkv[..., 2 * H:].reshape(B, S, num_heads, D).transpose(0, 2, 1, 3)
        s = jnp.einsum("bhqd,bhkd->bhqk", q, k) / np.sqrt(D) + mask[:, None, None, :]
        s = s - s.max(-1, keepdims=True)
        pr = jnp.exp(s)
        pr = pr / pr.sum(-1, keepdims=True)
        ctx = jnp.einsum("bhqk,bhkd->bhqd", pr, v).transpose(0, 2, 1, 3).reshape(B, S, H)
        ao = ctx @ f32(lp["ao_w"]) + lp["ao_b"]
        h1 = _ln_ref(ao + h, lp["ln1_g"], lp["ln1_b"])
        mid = h1 @ f32(lp["fi_w"]) + lp["fi_b"]
        mid = 0.5 * mid * (1.0 + jnp.tanh(0.7978845608028654 * (mid + 0.044715 * mid ** 3)))
        ff = mid @ f32(lp["fo_w"]) + lp["fo_b"]
        h = _ln_ref(ff + h1, lp["ln2_g"], lp["ln2_b"])
    pooled = jnp.tanh(h[:, 0] @ f32(p["pool_w"]) + p["pool_b"])
    hw = f32(p["head_w"])
    out_op = pooled @ hw[:, :8] + p["head_b"][:8]
    cls = jnp.take(h, index, axis=1)
    out_cc = (cls @ hw[:, 8:9] + p["head_b"][8:9])[..., 0]
    out_sc = (cls @ hw[:, 9:10] + p["head_b"][9:10])[..., 0]
    return out_sc, out_cc, out_op


# ----------------------------------------------------------------------------
# Main
# ----------------------------------------------------------------------------

if __name__ == "__main__":
    B, S, H, NH, L, INTER = 2, 16, 32, 4, 2, 128
    VOCAB, TYPES, MAXPOS = 100, 2, 32

    key = jax.random.PRNGKey(0)
    kp, kid, kmsk = jax.random.split(key, 3)

    params = init_params(kp, vocab=VOCAB, types=TYPES, maxpos=MAXPOS, H=H, I=INTER, L=L)

    input_ids = jax.random.randint(kid, (B, S), 0, VOCAB, dtype=jnp.int32)
    token_type_ids = jnp.concatenate(
        [jnp.zeros((B, S // 2), jnp.int32), jnp.ones((B, S // 2), jnp.int32)], axis=1
    )
    attention_mask = jnp.ones((B, S), jnp.int32)
    attention_mask = attention_mask.at[1, S - 3:].set(0)  # pad a few tokens in batch 1
    index = jnp.array([1, 5, 9, 13], jnp.int32)           # self.index (column CLS positions)

    outs = bert1_forward(params, input_ids, attention_mask, token_type_ids, index,
                         num_heads=NH)
    outs = jax.block_until_ready(outs)

    refs = reference_forward(params, input_ids, attention_mask, token_type_ids, index,
                             num_heads=NH)
    # bf16 matmul operands (f32 accumulation) + approx reciprocal in softmax:
    # loosened tolerances vs. the f32 reference.
    for got, want in zip(outs, refs):
        np.testing.assert_allclose(np.asarray(got), np.asarray(want),
                                   atol=2e-2, rtol=2e-2)

    # shapes: out_sel_col (B, num_cols), out_conds_col (B, num_cols), out_conds_op (B, 8)
    assert outs[0].shape == (B, index.shape[0])
    assert outs[1].shape == (B, index.shape[0])
    assert outs[2].shape == (B, 8)

    print("KERNEL_OK")
</pallas_src>

<mosaic_0001>
module attributes {stable_mosaic.version = 11 : i64} {
  func.func @_probe_copy_kernel(%arg0: i32, %arg1: memref<8x128xf32, #tpu.memory_space<vmem>>, %arg2: memref<8x128xf32, #tpu.memory_space<vmem>>) attributes {dimension_semantics = [#tpu.dimension_semantics<arbitrary>], iteration_bounds = array<i64: 2>, scalar_prefetch = 0 : i64, scratch_operands = 0 : i64, tpu.core_type = #tpu.core_type<tc>, window_params = [{pipeline_mode = #tpu.pipeline_mode<synchronous>, transform_indices = @transform_0, window_bounds = array<i64: 8, 128>}, {transform_indices = @transform_1, window_bounds = array<i64: 8, 128>}]} {
    %c0 = arith.constant 0 : index
    %c0_0 = arith.constant 0 : index
    %0 = vector.load %arg1[%c0, %c0_0] : memref<8x128xf32, #tpu.memory_space<vmem>>, vector<8x128xf32>
    %c0_1 = arith.constant 0 : index
    %c0_2 = arith.constant 0 : index
    %1 = vector.load %arg2[%c0_1, %c0_2] : memref<8x128xf32, #tpu.memory_space<vmem>>, vector<8x128xf32>
    tpu.vector_store %arg2[%c0_1, %c0_2], %0 {strides = array<i32>} : memref<8x128xf32, #tpu.memory_space<vmem>>, vector<8x128xf32>,
    return
  }
  func.func @transform_0(%arg0: i32) -> (i32, i32) {
    %c0_i32 = arith.constant 0 : i32
    %c0_i32_0 = arith.constant 0 : i32
    %c0_i32_1 = arith.constant 0 : i32
    return %c0_i32, %c0_i32_0 : i32, i32
  }
  func.func @transform_1(%arg0: i32) -> (i32, i32) {
    %c0_i32 = arith.constant 0 : i32
    %c0_i32_0 = arith.constant 0 : i32
    return %arg0, %c0_i32 : i32, i32
  }
}

module attributes {stable_mosaic.version = 11 : i64} {
  func.func @_emb_ln_kernel(%arg0: i32, %arg1: memref<1x16x32xf32, #tpu.memory_space<vmem>>, %arg2: memref<1x16x32xf32, #tpu.memory_space<vmem>>, %arg3: memref<16x32xf32, #tpu.memory_space<vmem>>, %arg4: memref<1x32xf32, #tpu.memory_space<vmem>>, %arg5: memref<1x32xf32, #tpu.memory_space<vmem>>, %arg6: memref<1x16x32xf32, #tpu.memory_space<vmem>>) attributes {dimension_semantics = [#tpu.dimension_semantics<parallel>], iteration_bounds = array<i64: 2>, scalar_prefetch = 0 : i64, scratch_operands = 0 : i64, tpu.core_type = #tpu.core_type<tc>, window_params = [{transform_indices = @transform_0, window_bounds = array<i64: 1, 16, 32>}, {transform_indices = @transform_1, window_bounds = array<i64: 1, 16, 32>}, {pipeline_mode = #tpu.pipeline_mode<synchronous>, transform_indices = @transform_2, window_bounds = array<i64: 16, 32>}, {pipeline_mode = #tpu.pipeline_mode<synchronous>, transform_indices = @transform_3, window_bounds = array<i64: 1, 32>}, {pipeline_mode = #tpu.pipeline_mode<synchronous>, transform_indices = @transform_4, window_bounds = array<i64: 1, 32>}, {transform_indices = @transform_5, window_bounds = array<i64: 1, 16, 32>}]} {
    %c0 = arith.constant 0 : index
    %c0_0 = arith.constant 0 : index
    %c0_1 = arith.constant 0 : index
    %0 = vector.load %arg1[%c0, %c0_0, %c0_1] : memref<1x16x32xf32, #tpu.memory_space<vmem>>, vector<1x16x32xf32>
    %1 = vector.shape_cast %0 : vector<1x16x32xf32> to vector<16x32xf32>
    %c0_2 = arith.constant 0 : index
    %c0_3 = arith.constant 0 : index
    %c0_4 = arith.constant 0 : index
    %2 = vector.load %arg2[%c0_2, %c0_3, %c0_4] : memref<1x16x32xf32, #tpu.memory_space<vmem>>, vector<1x16x32xf32>
    %3 = vector.shape_cast %2 : vector<1x16x32xf32> to vector<16x32xf32>
    %4 = arith.addf %1, %3 : vector<16x32xf32>
    %c0_5 = arith.constant 0 : index
    %c0_6 = arith.constant 0 : index
    %5 = vector.load %arg3[%c0_5, %c0_6] : memref<16x32xf32, #tpu.memory_space<vmem>>, vector<16x32xf32>
    %6 = arith.addf %4, %5 : vector<16x32xf32>
    %c0_7 = arith.constant 0 : index
    %c0_8 = arith.constant 0 : index
    %7 = vector.load %arg4[%c0_7, %c0_8] : memref<1x32xf32, #tpu.memory_space<vmem>>, vector<1x32xf32>
    %c0_9 = arith.constant 0 : index
    %c0_10 = arith.constant 0 : index
    %8 = vector.load %arg5[%c0_9, %c0_10] : memref<1x32xf32, #tpu.memory_space<vmem>>, vector<1x32xf32>
    %cst = arith.constant dense<0.000000e+00> : vector<16xf32>
    %9 = vector.multi_reduction <add>, %6, %cst [1] : vector<16x32xf32> to vector<16xf32>
    %10 = vector.shape_cast %9 : vector<16xf32> to vector<16x1xf32>
    %cst_11 = arith.constant 3.200000e+01 : f32
    %11 = vector.broadcast %cst_11 : f32 to vector<16x1xf32>
    %12 = arith.divf %10, %11 : vector<16x1xf32>
    %13 = vector.broadcast %12 : vector<16x1xf32> to vector<16x32xf32>
    %14 = arith.subf %6, %13 : vector<16x32xf32>
    %15 = arith.mulf %14, %14 : vector<16x32xf32>
    %cst_12 = arith.constant dense<0.000000e+00> : vector<16xf32>
    %16 = vector.multi_reduction <add>, %15, %cst_12 [1] : vector<16x32xf32> to vector<16xf32>
    %17 = vector.shape_cast %16 : vector<16xf32> to vector<16x1xf32>
    %cst_13 = arith.constant 3.200000e+01 : f32
    %18 = vector.broadcast %cst_13 : f32 to vector<16x1xf32>
    %19 = arith.divf %17, %18 : vector<16x1xf32>
    %cst_14 = arith.constant 9.99999996E-13 : f32
    %20 = vector.broadcast %cst_14 : f32 to vector<16x1xf32>
    %21 = arith.addf %19, %20 : vector<16x1xf32>
    %22 = math.rsqrt %21 : vector<16x1xf32>
    %23 = vector.broadcast %22 : vector<16x1xf32> to vector<16x32xf32>
    %24 = arith.mulf %14, %23 : vector<16x32xf32>
    %25 = vector.broadcast %7 : vector<1x32xf32> to vector<16x32xf32>
    %26 = arith.mulf %24, %25 : vector<16x32xf32>
    %27 = vector.broadcast %8 : vector<1x32xf32> to vector<16x32xf32>
    %28 = arith.addf %26, %27 : vector<16x32xf32>
    %c0_15 = arith.constant 0 : index
    %c0_16 = arith.constant 0 : index
    %c0_17 = arith.constant 0 : index
    %29 = vector.load %arg6[%c0_15, %c0_16, %c0_17] : memref<1x16x32xf32, #tpu.memory_space<vmem>>, vector<1x16x32xf32>
    %30 = vector.shape_cast %29 : vector<1x16x32xf32> to vector<16x32xf32>
    %31 = vector.shape_cast %28 : vector<16x32xf32> to vector<1x16x32xf32>
    tpu.vector_store %arg6[%c0_15, %c0_16, %c0_17], %31 {strides = array<i32>} : memref<1x16x32xf32, #tpu.memory_space<vmem>>, vector<1x16x32xf32>,
    return
  }
  func.func @transform_0(%arg0: i32) -> (i32, i32, i32) {
    %c0_i32 = arith.constant 0 : i32
    %c0_i32_0 = arith.constant 0 : i32
    %c0_i32_1 = arith.constant 0 : i32
    return %arg0, %c0_i32, %c0_i32_0 : i32, i32, i32
  }
  func.func @transform_1(%arg0: i32) -> (i32, i32, i32) {
    %c0_i32 = arith.constant 0 : i32
    %c0_i32_0 = arith.constant 0 : i32
    %c0_i32_1 = arith.constant 0 : i32
    return %arg0, %c0_i32, %c0_i32_0 : i32, i32, i32
  }
  func.func @transform_2(%arg0: i32) -> (i32, i32) {
    %c0_i32 = arith.constant 0 : i32
    %c0_i32_0 = arith.constant 0 : i32
    %c0_i32_1 = arith.constant 0 : i32
    return %c0_i32, %c0_i32_0 : i32, i32
  }
  func.func @transform_3(%arg0: i32) -> (i32, i32) {
    %c0_i32 = arith.constant 0 : i32
    %c0_i32_0 = arith.constant 0 : i32
    %c0_i32_1 = arith.constant 0 : i32
    return %c0_i32, %c0_i32_0 : i32, i32
  }
  func.func @transform_4(%arg0: i32) -> (i32, i32) {
    %c0_i32 = arith.constant 0 : i32
    %c0_i32_0 = arith.constant 0 : i32
    %c0_i32_1 = arith.constant 0 : i32
    return %c0_i32, %c0_i32_0 : i32, i32
  }
  func.func @transform_5(%arg0: i32) -> (i32, i32, i32) {
    %c0_i32 = arith.constant 0 : i32
    %c0_i32_0 = arith.constant 0 : i32
    %c0_i32_1 = arith.constant 0 : i32
    return %arg0, %c0_i32, %c0_i32_0 : i32, i32, i32
  }
}

</mosaic_0001>

<bundles_post_ra>
// kernel: tpu_custom_call.1
= control target key start
LH: loop header
LB: loop body
LE: loop exit
PB: predicated region body
PF: predicated region fallthrough
CT: control target
= control target key end

     0   :  { %6 = vsyncpa [#allocation3], 0  ;;  %s481_s0 = inlined_call_operand.hbm [shape: f32[8,128], index: 0, kind: input, shape index: {}]   ;;  %s482_s1 = inlined_call_operand.hbm [shape: f32[16,128], index: 1, kind: output, shape index: {}]  }
   0x1   :  { %7 = vsyncpa [#allocation4], 0 }
   0x2   :  { %9 = vsyncpa [#allocation4 + $0x1], 0  ;;  %s351_s6 = smov 0   ;;  %s353_s7 = smov 0  }
   0x3   :  { %s355_s8 = smov 0   ;;  %s357_s9 = smov 0  }
   0x4 LB: > { %s372_s10 = sadd.s32 4294967295, %s337_s9   ;;  %s183_s11 = sadd.s32 4294967294, %s337_s9   ;;  %s337_s9 = sphi %s357_s9, %s498_s9   ;;  %s333_s8 = sphi %s355_s8, %s497_s8   ;;  %s329_s7 = sphi %s353_s7, %s496_s7   ;;  %s325_s6 = sphi %s351_s6, %s495_s6  }
   0x5   : > { %s376_s12 = sadd.s32 1, %s337_s9   ;;  %s43_s13 = sadd.s32 1, %s333_s8 }
   0x6   : > { %s40_s14 = ssub.s32 %s337_s9, %s376_s12  ;;  %p53_p0 = scmp.ne.s32.totalorder %s333_s8, %s329_s7 }
   0x7   : > { %p41_p1 = scmp.eq.s32.totalorder %s40_s14, 0  ;;  %p54_p2 = scmp.eq.s32.totalorder %s372_s10, 1 }
   0x8   : > { %p59_p3 = scmp.ne.s32.totalorder %s329_s7, %s325_s6  ;;  %p60_p4 = scmp.eq.s32.totalorder %s183_s11, 1 }
   0x9   : > { %s387_s15 = scalar_select %p41_p1, %s333_s8, %s43_s13  }
   0xa   : > { %p389_p5 = por %p54_p2, %p53_p0  ;;  %p393_p6 = por %p60_p4, %p59_p3 }
   0xb   : > { %p184_p7 = scmp.ge.s32.totalorder %s337_s9, 1  ;;  %p67_p8 = scmp.lt.s32.totalorder %s337_s9, 3 }
   0xc   : > { %s486_s16 = scalar_select %p389_p5, 1, 0 }
   0xd   : > { %s487_s17 = scalar_select %p393_p6, 1, 0 }
   0xe   : > { %p483_p9 = scmp.eq.s32.totalorder %s372_s10, 0  ;;  %p400_p10 = pnand %p184_p7, %p67_p8 }
   0xf   : > { %s339_s19 = smov [#allocation2]   ;;  %s243_s24 = scalar_lea.hbm %s481_s0, 128 }
  0x10   : > { %s488_s18 = scalar_select %p400_p10, 1, 0 }
  0x11   : > { %s80_s20 = sshll.u32 %s339_s19, 4  ;;  %p199_p11 = pneg %p400_p10  ;;  %s81_s20 = int_to_ptr.vmem [resolvable:$true] %s80_s20 }
  0x12   : > { %p244_p13 = scmp.ne.s32.totalorder %s481_s0, %s243_s24  ;;  %p250_p3 = scmp.lt.u32.totalorder %s243_s24, %s481_s0 }
  0x13   : > { %p408_p12 = pnand %p483_p9, %p199_p11 }
  0x15   : > { %p245_p0 = pneg %p408_p12 }
  0x17   : > { %p246_p1 = pnand %p245_p0, %p244_p13 }
  0x19   : > { %p247_p2 = pneg %p246_p1 }
  0x1b   : > { %p252_p4 = pnand %p250_p3, %p247_p2 }
  0x1d   : > { %255 = shalt.err (!%p252_p4)
}
  0x1e   : > { %s256_s29 = scalar_lea.vmem %s81_s20, 128  ;;  %p264_p9 = scmp.lt.s32.totalorder %s81_s20, %s81_s20 }
  0x1f   : > { %p257_p7 = scmp.ne.s32.totalorder %s81_s20, %s256_s29  ;;  %p265_p6 = scmp.lt.s32.totalorder %s256_s29, %s256_s29 }
  0x21   : > { %p259_p8 = pnand %p257_p7, %p245_p0  ;;  %p266_p5 = por %p265_p6, %p264_p9 }
  0x23   : > { %p260_p11 = pneg %p259_p8 }
  0x25   : > { %p267_p10 = pnand %p266_p5, %p260_p11 }
  0x27   : > { %270 = shalt.err (!%p267_p10)
}
  0x28   : > { %202 = dma.hbm_to_vmem [thread:$0]  (!%p408_p12), %s481_s0, 128, %s81_s20, [#allocation3]  }
  0x29   : > { %p490_p13 = scmp.ne.s32.totalorder %s488_s18, 0 }
  0x2a   : > { %p491_p1 = scmp.eq.s32.totalorder (!%p490_p13), %s372_s10, 0 }
  0x2b   : > { %93 = sbr.rel (%p490_p13) target bundleno = 77 (0x4d), region = 24 }
  0x32   : > { %316 = dma.done.wait (%p491_p1), [#allocation3], 128   ;;  %p492_p0 = pmov %p491_p1 }
  0x33   : > { %s105_s3 = sand.u32 1, %s329_s7   ;;  %s190_s13 = sshll.u32 %s372_s10, 7  ;;  %v108_v0 = vld [vmem:[#allocation2] sm:$0xff] }
  0x34   : > { %318 = vsyncadd (%p492_p0), [#allocation3], 4294967168  ;;  %s188_s4 = sshll.u32 %s105_s3, 3  ;;  %s441_s18 = scalar_lea.hbm %s482_s1, %s190_s13 }
  0x35   : > { %s107_s5 = scalar_lea.vmem [#allocation5], %s188_s4  ;;  %s111_s20 = scalar_lea.sflag [#allocation4], %s105_s3 }
  0x36   : > { %s124_s11 = sshll.u32 %s107_s5, 4  ;;  %109 = vst [vmem:[%s107_s5] sm:$0xff] %v108_v0  ;;  %p493_p6 = scmp.ne.s32.totalorder %s486_s16, 0  ;;  %s436_s11 = int_to_ptr.vmem [resolvable:$true] %s124_s11 }
  0x37   : > { %s271_s21 = scalar_lea.vmem %s436_s11, 128  ;;  %s340_s22 = smov [#allocation5]  }
  0x38   : > { %p272_p5 = scmp.ne.s32.totalorder %s436_s11, %s271_s21  ;;  %s275_s10 = sshll.u32 %s340_s22, 4  ;;  %s276_s10 = int_to_ptr.vmem [resolvable:$false] %s275_s10 }
  0x39   : > { %s277_s23 = scalar_lea.vmem %s276_s10, 256  ;;  %p278_p12 = scmp.lt.s32.totalorder %s436_s11, %s276_s10 }
  0x3a   : > { %p273_p9 = pnand %p272_p5, %p493_p6  ;;  %p279_p2 = scmp.lt.s32.totalorder %s277_s23, %s271_s21 }
  0x3c   : > { %p274_p10 = pneg %p273_p9  ;;  %p280_p3 = por %p279_p2, %p278_p12 }
  0x3e   : > { %p281_p4 = pnand %p280_p3, %p274_p10 }
  0x40   : > { %284 = shalt.err (!%p281_p4)
}
  0x41   : > { %s285_s24 = scalar_lea.hbm %s441_s18, 128  ;;  %s289_s27 = scalar_lea.hbm %s482_s1, 256 }
  0x42   : > { %p286_p7 = scmp.ne.s32.totalorder %s441_s18, %s285_s24  ;;  %p290_p13 = scmp.lt.u32.totalorder %s441_s18, %s482_s1 }
  0x43   : > { %p291_p1 = scmp.lt.u32.totalorder %s289_s27, %s285_s24  ;;  %p293_p5 = scmp.lt.u32.totalorder %s285_s24, %s441_s18 }
  0x44   : > { %p287_p8 = pnand %p286_p7, %p493_p6 }
  0x45   : > { %p292_p0 = por %p291_p1, %p290_p13 }
  0x46   : > { %p288_p11 = pneg %p287_p8 }
  0x47   : > { %p294_p9 = por %p293_p5, %p292_p0 }
  0x49   : > { %p295_p10 = pnand %p294_p9, %p288_p11 }
  0x4b   : > { %298 = shalt.err (!%p295_p10)
}
  0x4c   : > { %197 = dma.vmem_to_hbm [thread:$0]  (%p493_p6), %s436_s11, 128, %s441_s18, %s111_s20  }
  0x4d PF: > { %p209_p12 = scmp.ge.s32.totalorder %s337_s9, 2  ;;  %s136_s30 = sand.u32 1, %s325_s6  }
  0x4e   : > { %p494_p2 = scmp.ne.s32.totalorder %s487_s17, 0  ;;  %s137_s2 = scalar_lea.sflag [#allocation4], %s136_s30 }
  0x50   : > { %p204_p3 = pnand %p209_p12, %p494_p2 }
  0x52   : > { %320 = dma.done.wait (!%p204_p3), %s137_s2, 128  }
  0x53   : > { %322 = vsyncadd (!%p204_p3), %s137_s2, 4294967168  ;;  %p12_p4 = scmp.ge.s32.totalorder %s376_s12, 4   ;;  %s495_s6 = smov %s329_s7 }
  0x54   : > { %s496_s7 = smov %s333_s8  ;;  %s497_s8 = smov %s387_s15 }
  0x55   : > { %s498_s9 = smov %s376_s12  ;;  %14 = sbr.rel (!%p12_p4) target bundleno = 4 (0x4), region = 61 }
  0x5c   :  { %142 = vsyncpa [#allocation3], 1 }
  0x5d   :  { %144 = vsyncpa [#allocation3 + $0x1], 1 }
  0x5e   :  { %145 = vsyncpa [#allocation4], 1 }
  0x5f   :  { %147 = vsyncpa [#allocation4 + $0x1], 1 }

// kernel: tpu_custom_call.1
= control target key start
LH: loop header
LB: loop body
LE: loop exit
PB: predicated region body
PF: predicated region fallthrough
CT: control target
= control target key end

     0   :  { %s1041_s0 = inlined_call_operand.hbm [shape: f32[2,16,32], index: 0, kind: input, shape index: {}]   ;;  %s1042_s1 = inlined_call_operand.hbm [shape: f32[2,16,32], index: 1, kind: input, shape index: {}]   ;;  %s1043_s2 = inlined_call_operand.hbm [shape: f32[16,32], index: 2, kind: input, shape index: {}]   ;;  %s1044_s3 = inlined_call_operand.vmem [shape: f32[1,32], index: 3, kind: input, shape index: {}]   ;;  %s1045_s4 = inlined_call_operand.vmem [shape: f32[1,32], index: 4, kind: input, shape index: {}]   ;;  %s1046_s5 = inlined_call_operand.hbm [shape: f32[2,16,32], index: 5, kind: output, shape index: {}]  }
   0x1   :  { %1055 = sst [smem:[#allocation15_spill]] %s1041_s0 }
   0x2   :  { %1056 = sst [smem:[#allocation16_spill]] %s1043_s2 }
   0x3   :  { %10 = vsyncpa [#allocation3], 0 }
   0x4   :  { %12 = vsyncpa [#allocation3 + $0x1], 0 }
   0x5   :  { %13 = vsyncpa [#allocation6], 0 }
   0x6   :  { %15 = vsyncpa [#allocation6 + $0x1], 0 }
   0x7   :  { %16 = vsyncpa [#allocation4], 0 }
   0x8   :  { %18 = vsyncpa [#allocation4 + $0x1], 0  ;;  %s771_s18 = smov 0   ;;  %s773_s19 = smov 0  }
   0x9   :  { %s775_s20 = smov 0   ;;  %s777_s21 = smov 0  }
   0xa LB: > { %1057 = sst [smem:[#allocation13_spill]] %s727_s20  ;;  %s792_s22 = sadd.s32 4294967295, %s731_s21   ;;  %s731_s21 = sphi %s777_s21, %s1080_s21   ;;  %s727_s20 = sphi %s775_s20, %s1077_s20   ;;  %s723_s19 = sphi %s773_s19, %s1079_s19   ;;  %s719_s18 = sphi %s771_s18, %s1078_s18  }
   0xb   : > { %s474_s23 = sadd.s32 4294967294, %s731_s21   ;;  %p44_p0 = scmp.ne.s32.totalorder %s723_s19, %s719_s18 }
   0xc   : > { %p1047_p1 = scmp.eq.s32.totalorder %s792_s22, 0  ;;  %p163_p3 = scmp.eq.s32.totalorder %s474_s23, 1 }
   0xd   : > { %p475_p5 = scmp.ge.s32.totalorder %s731_s21, 1  ;;  %p170_p7 = scmp.lt.s32.totalorder %s731_s21, 3 }
   0xe   : > { %p801_p4 = por %p1047_p1, %p44_p0  ;;  %p806_p6 = por %p163_p3, %p44_p0 }
   0xf   : > { %p811_p8 = pnand %p475_p5, %p170_p7  ;;  %s733_s27 = smov [#allocation7]  }
  0x10   : > { %s1058_s24 = scalar_select %p801_p4, 1, 0 }
  0x11   : > { %s1059_s25 = scalar_select %p806_p6, 1, 0 }
  0x12   : > { %s1060_s26 = scalar_select %p811_p8, 1, 0 }
  0x13   : > { %s182_s28 = sshll.u32 %s733_s27, 4  ;;  %p509_p9 = pneg %p811_p8  ;;  %s815_s28 = int_to_ptr.vmem [resolvable:$true] %s182_s28 }
  0x14   : > { %s827_s30 = sadd.s32 1, %s731_s21   ;;  %s31_s6 = sadd.s32 1, %s727_s20 }
  0x15   : > { %p822_p11 = pnand %p509_p9, %p1047_p1  ;;  %s28_s7 = ssub.s32 %s731_s21, %s827_s30 }
  0x16   : > { %s1062_s2 = sld [smem:[#allocation16_spill]] }
  0x17   : > { %p571_p13 = pneg %p822_p11 }
  0x1c   : > { %s569_s10 = scalar_lea.hbm %s1062_s2, 256 }
  0x1d   : > { %p570_p12 = scmp.ne.s32.totalorder %s1062_s2, %s569_s10  ;;  %p576_p5 = scmp.lt.u32.totalorder %s569_s10, %s1062_s2 }
  0x1f   : > { %p572_p0 = pnand %p571_p13, %p570_p12 }
  0x21   : > { %p573_p3 = pneg %p572_p0 }
  0x23   : > { %p578_p7 = pnand %p576_p5, %p573_p3 }
  0x25   : > { %581 = shalt.err (!%p578_p7)
}
  0x26   : > { %s582_s15 = scalar_lea.vmem %s815_s28, 256  ;;  %p590_p2 = scmp.lt.s32.totalorder %s815_s28, %s815_s28 }
  0x27   : > { %p583_p9 = scmp.ne.s32.totalorder %s815_s28, %s582_s15  ;;  %p591_p6 = scmp.lt.s32.totalorder %s582_s15, %s582_s15 }
  0x29   : > { %p585_p10 = pnand %p583_p9, %p571_p13  ;;  %p592_p4 = por %p591_p6, %p590_p2 }
  0x2b   : > { %p586_p1 = pneg %p585_p10 }
  0x2d   : > { %p593_p8 = pnand %p592_p4, %p586_p1 }
  0x2f   : > { %596 = shalt.err (!%p593_p8)
}
  0x30   : > { %s1050_s16 = smov 128   ;;  %s1052_s17 = smov 8  }
  0x31   : > { %512 = dma.hbm_to_vmem [thread:$0]  (!%p822_p11), %s1062_s2, 256, %s815_s28, [#allocation6], %s1050_s16, %s1050_s16, %s1052_s17  }
  0x32   : > { %p29_p1 = scmp.eq.s32.totalorder %s28_s7, 0  ;;  %p38_p2 = scmp.ne.s32.totalorder %s727_s20, %s723_s19 }
  0x33   : > { %p39_p4 = scmp.eq.s32.totalorder %s731_s21, 0  ;;  %p525_p6 = scmp.lt.s32.totalorder %s731_s21, 2 }
  0x34   : > { %s861_s8 = scalar_select %p29_p1, %s727_s20, %s31_s6  }
  0x35   : > { %p40_p8 = por %p39_p4, %p38_p2  ;;  %p1064_p10 = scmp.eq.s32.totalorder %s792_s22, 1 }
  0x36   : > { %1063 = sst [smem:[#allocation14_spill]] %s861_s8  ;;  %s202_s29 = sand.u32 1, %s727_s20  }
  0x37   : > { %p865_p12 = por %p1064_p10, %p38_p2  ;;  %s496_s10 = sshll.u32 %s731_s21, 8 }
  0x38   : > { %s871_s11 = sshll.u32 %s202_s29, 4  ;;  %s1066_s0 = sld [smem:[#allocation15_spill]] }
  0x39   : > { %s206_s6 = scalar_lea.vmem [#allocation2], %s871_s11  ;;  %p879_p11 = pnand %p525_p6, %p40_p8 }
  0x3a   : > { %s213_s7 = sshll.u32 %s206_s6, 4  ;;  %s888_s27 = scalar_lea.hbm %s1042_s1, %s496_s10  ;;  %s883_s7 = int_to_ptr.vmem [resolvable:$true] %s213_s7 }
  0x3b   : > { %s890_s12 = scalar_lea.sflag [#allocation3], %s202_s29  ;;  %p599_p0 = pneg %p879_p11 }
  0x3e   : > { %s876_s28 = scalar_lea.hbm %s1066_s0, %s496_s10  ;;  %s602_s17 = scalar_lea.hbm %s1066_s0, 512 }
  0x3f   : > { %s597_s13 = scalar_lea.hbm %s876_s28, 256  ;;  %p603_p7 = scmp.lt.u32.totalorder %s876_s28, %s1066_s0 }
  0x40   : > { %p598_p13 = scmp.ne.s32.totalorder %s876_s28, %s597_s13  ;;  %p604_p9 = scmp.lt.u32.totalorder %s602_s17, %s597_s13 }
  0x41   : > { %p606_p2 = scmp.lt.u32.totalorder %s597_s13, %s876_s28 }
  0x42   : > { %p600_p3 = pnand %p599_p0, %p598_p13  ;;  %p605_p1 = por %p604_p9, %p603_p7 }
  0x44   : > { %p601_p5 = pneg %p600_p3  ;;  %p607_p4 = por %p606_p2, %p605_p1 }
  0x46   : > { %p608_p6 = pnand %p607_p4, %p601_p5 }
  0x48   : > { %611 = shalt.err (!%p608_p6)
}
  0x49   : > { %s612_s29 = scalar_lea.vmem %s883_s7, 256  ;;  %s736_s16 = smov [#allocation2]  }
  0x4a   : > { %p613_p8 = scmp.ne.s32.totalorder %s883_s7, %s612_s29  ;;  %s617_s10 = sshll.u32 %s736_s16, 4  ;;  %s618_s10 = int_to_ptr.vmem [resolvable:$false] %s617_s10 }
  0x4b   : > { %s619_s2 = scalar_lea.vmem %s618_s10, 512  ;;  %p620_p3 = scmp.lt.s32.totalorder %s883_s7, %s618_s10 }
  0x4c   : > { %p615_p10 = pnand %p613_p8, %p599_p0  ;;  %p621_p7 = scmp.lt.s32.totalorder %s619_s2, %s612_s29 }
  0x4e   : > { %p616_p13 = pneg %p615_p10  ;;  %p622_p9 = por %p621_p7, %p620_p3 }
  0x50   : > { %p623_p1 = pnand %p622_p9, %p616_p13 }
  0x52   : > { %626 = shalt.err (!%p623_p1)
}
  0x53   : > { %s1068_s17 = smov 8   ;;  %s1069_s8 = smov 128  }
  0x54   : > { %516 = dma.hbm_to_vmem [thread:$0]  (!%p879_p11), %s876_s28, 256, %s883_s7, %s890_s12, %s1069_s8, %s1069_s8, %s1068_s17  }
  0x55   : > { %s227_s15 = scalar_lea.vmem [#allocation5], %s871_s11  ;;  %s223_s13 = sand.u32 1, %s731_s21  }
  0x56   : > { %s234_s23 = sshll.u32 %s227_s15, 4  ;;  %s925_s6 = scalar_lea.sflag [#allocation6], %s223_s13  ;;  %s923_s23 = int_to_ptr.vmem [resolvable:$true] %s234_s23 }
  0x57   : > { %s627_s29 = scalar_lea.hbm %s888_s27, 256  ;;  %s632_s2 = scalar_lea.hbm %s1042_s1, 512 }
  0x58   : > { %p628_p5 = scmp.ne.s32.totalorder %s888_s27, %s627_s29  ;;  %p633_p6 = scmp.lt.u32.totalorder %s888_s27, %s1042_s1 }
  0x59   : > { %p634_p8 = scmp.lt.u32.totalorder %s632_s2, %s627_s29  ;;  %p636_p13 = scmp.lt.u32.totalorder %s627_s29, %s888_s27 }
  0x5a   : > { %p630_p2 = pnand %p628_p5, %p599_p0 }
  0x5b   : > { %p635_p10 = por %p634_p8, %p633_p6 }
  0x5c   : > { %p631_p4 = pneg %p630_p2 }
  0x5d   : > { %p637_p3 = por %p636_p13, %p635_p10 }
  0x5f   : > { %p638_p7 = pnand %p637_p3, %p631_p4 }
  0x61   : > { %641 = shalt.err (!%p638_p7)
}
  0x62   : > { %s642_s11 = scalar_lea.vmem %s923_s23, 256  ;;  %s737_s28 = smov [#allocation5]  }
  0x63   : > { %p643_p9 = scmp.ne.s32.totalorder %s923_s23, %s642_s11  ;;  %s647_s7 = sshll.u32 %s737_s28, 4  ;;  %s648_s7 = int_to_ptr.vmem [resolvable:$false] %s647_s7 }
  0x64   : > { %s649_s0 = scalar_lea.vmem %s648_s7, 512  ;;  %p650_p2 = scmp.lt.s32.totalorder %s923_s23, %s648_s7 }
  0x65   : > { %p645_p1 = pnand %p643_p9, %p599_p0  ;;  %p651_p6 = scmp.lt.s32.totalorder %s649_s0, %s642_s11 }
  0x67   : > { %p646_p5 = pneg %p645_p1  ;;  %p652_p8 = por %p651_p6, %p650_p2 }
  0x69   : > { %p653_p10 = pnand %p652_p8, %p646_p5 }
  0x6b   : > { %656 = shalt.err (!%p653_p10)
}
  0x6c   : > { %519 = dma.hbm_to_vmem [thread:$0]  (!%p879_p11), %s888_s27, 256, %s923_s23, %s925_s6, %s1069_s8, %s1069_s8, %s1068_s17  }
  0x6d   : > { %p1070_p0 = scmp.ne.s32.totalorder %s1060_s26, 0 }
  0x6e   : > { %s957_s20 = sand.u32 (!%p1070_p0), 1, %s723_s19   ;;  %p1071_p4 = scmp.ne.s32.totalorder (!%p1070_p0), %s1058_s24, 0 }
  0x6f   : > { %246 = sbr.rel (%p1070_p0) target bundleno = 463 (0x1cf), region = 40  ;;  %s960_s12 = sshll.u32 (!%p1070_p0), %s957_s20, 4 }
  0x70   : > { %s249_s14 = scalar_lea.sflag (!%p1070_p0), [#allocation3], %s957_s20  ;;  %s252_s15 = scalar_lea.vmem (!%p1070_p0), [#allocation2], %s960_s12 }
  0x76   : > { %702 = dma.done.wait (%p1071_p4), %s249_s14, 256  }
  0x77   : > { %704 = vsyncadd (%p1071_p4), %s249_s14, 4294967040  ;;  %s257_s26 = sand.u32 1, %s792_s22   ;;  %s261_s17 = scalar_lea.vmem [#allocation5], %s960_s12 }
  0x78   : > { %s258_s27 = scalar_lea.sflag [#allocation6], %s257_s26 }
  0x79   : > { %706 = dma.done.wait (%p1071_p4), %s258_s27, 256  }
  0x7a   : > { %708 = vsyncadd (%p1071_p4), %s258_s27, 4294967040  ;;  %p1072_p11 = scmp.eq.s32.totalorder %s792_s22, 0 }
  0x7c   : > { %710 = dma.done.wait (%p1072_p11), [#allocation6], 256   ;;  %p1073_p13 = pmov %p1072_p11 }
  0x7d   : > { %v297_v0 = vld [vmem:[%s252_s15] sm:$0xff]  ;;  %v298_v4 = vld [vmem:[%s252_s15 + $0x8] sm:$0xff]  ;;  %vm309_vm0 = vcmask 261120   ;;  %s498_s6 = sshll.u32 %s792_s22, 8  ;;  %s296_s29 = scalar_lea.vmem [#allocation8], %s960_s12 }
  0x7e   : > { %712 = vsyncadd (%p1073_p13), [#allocation6], 4294967040  ;;  %v299_v1 = vld [vmem:[%s261_s17] sm:$0xff]  ;;  %v300_v5 = vld [vmem:[%s261_s17 + $0x8] sm:$0xff]  ;;  %s369_s16 = sshll.u32 %s296_s29, 4  ;;  %s994_s11 = scalar_lea.hbm %s1046_s5, %s498_s6  ;;  %s996_s16 = int_to_ptr.vmem [resolvable:$true] %s369_s16 }
  0x7f   : > { %v303_v2 = vld [vmem:[#allocation7] sm:$0xff]  ;;  %v301_v3 = vadd.f32 %v299_v1, %v297_v0  ;;  %v304_v6 = vld [vmem:[#allocation7 + $0x8] sm:$0xff]  ;;  %v302_v7 = vadd.f32 %v300_v5, %v298_v4  ;;  %s356_s28 = scalar_lea.sflag [#allocation4], %s957_s20  ;;  %s657_s22 = scalar_lea.vmem %s996_s16, 256 }
  0x80   : > { %v489_v29 = vld [vmem:[%s1044_s3] ss:$0 sm:$0xff]  ;;  %p658_p3 = scmp.ne.s32.totalorder %s996_s16, %s657_s22  ;;  %s738_s7 = smov [#allocation8]  }
  0x81   : > { %v305_v8 = vadd.f32 %v303_v2, %v301_v3  ;;  %v306_v9 = vadd.f32 %v304_v6, %v302_v7  ;;  %v490_v31 = vld [vmem:[%s1045_s4] ss:$0 sm:$0xff]  ;;  %s661_s0 = sshll.u32 %s738_s7, 4  ;;  %s662_s0 = int_to_ptr.vmem [resolvable:$false] %s661_s0 }
  0x82   : > { %p659_p7 = pnand %p658_p3, %p865_p12  ;;  %s663_s12 = scalar_lea.vmem %s662_s0, 512 }
  0x83   : > { %v310_v10 = vsel %vm309_vm0, %v305_v8, 0.0  ;;  %v313_v11 = vsel %vm309_vm0, %v306_v9, 0.0  ;;  %p664_p1 = scmp.lt.s32.totalorder %s996_s16, %s662_s0  ;;  %p665_p5 = scmp.lt.s32.totalorder %s663_s12, %s657_s22 }
  0x84   : > { %311 = vadd.xlane.f32.xlu0 %v310_v10  ;;  %p660_p9 = pneg %p659_p7 }
  0x85   : > { %p666_p2 = por %p665_p5, %p664_p1 }
  0x87   : > { %p667_p6 = pnand %p666_p2, %p660_p9 }
  0x88   : > { %314 = vadd.xlane.f32.xlu0 %v313_v11 }
 0x111   : > { %v312_v12 = vpop.xlane.xlu0 %311 }
 0x112   : > { %v317_v13 = vmul.f32 0.03125, %v312_v12 }
 0x114   : > { %v319_v14 = vsub.f32 %v305_v8, %v317_v13 }
 0x115   : > { %v315_v15 = vpop.xlane.xlu0 %314 }
 0x116   : > { %v318_v16 = vmul.f32 0.03125, %v315_v15  ;;  %v321_v17 = vmul.f32 %v319_v14, %v319_v14 }
 0x118   : > { %v320_v18 = vsub.f32 %v306_v9, %v318_v16  ;;  %v323_v19 = vsel %vm309_vm0, %v321_v17, 0.0 }
 0x119   : > { %324 = vadd.xlane.f32.xlu1 %v323_v19 }
 0x11a   : > { %v322_v20 = vmul.f32 %v320_v18, %v320_v18 }
 0x11c   : > { %v326_v21 = vsel %vm309_vm0, %v322_v20, 0.0 }
 0x11d   : > { %327 = vadd.xlane.f32.xlu1 %v326_v21 }
 0x1a6   : > { %v325_v22 = vpop.xlane.xlu1 %324 }
 0x1a7   : > { %v329_v23 = vmul.f32 0.03125, %v325_v22 }
 0x1a9   : > { %v331_v24 = vadd.f32 1e-12, %v329_v23 }
 0x1aa   : > { %v328_v25 = vpop.xlane.xlu1 %327 }
 0x1ab   : > { %565 = vrsqrt.f32 %v331_v24  ;;  %v330_v26 = vmul.f32 0.03125, %v328_v25 }
 0x1ad   : > { %v332_v27 = vadd.f32 1e-12, %v330_v26 }
 0x1af   : > { %567 = vrsqrt.f32 %v332_v27 }
 0x1b5   : > { %v566_v28 = vpop.eup %565 }
 0x1b6   : > { %v335_v30 = vmul.f32 %v566_v28, %v319_v14 }
 0x1b8   : > { %v343_v32 = vmul.f32 %v489_v29, %v335_v30 }
 0x1b9   : > { %v568_v33 = vpop.eup %567 }
 0x1ba   : > { %v351_v34 = vadd.f32 %v490_v31, %v343_v32  ;;  %v336_v35 = vmul.f32 %v568_v33, %v320_v18 }
 0x1bc   : > { %v344_v36 = vmul.f32 %v489_v29, %v336_v35  ;;  %353 = vst.msk [vmem:[%s296_s29] sm:$0xff] %vm309_vm0, %v351_v34 }
 0x1be   : > { %v352_v37 = vadd.f32 %v490_v31, %v344_v36 }
 0x1c0   : > { %354 = vst.msk [vmem:[%s296_s29 + $0x8] sm:$0xff] %vm309_vm0, %v352_v37 }
 0x1c1   : > { %670 = shalt.err (!%p667_p6)
}
 0x1c2   : > { %s671_s14 = scalar_lea.hbm %s994_s11, 256  ;;  %s675_s27 = scalar_lea.hbm %s1046_s5, 512 }
 0x1c3   : > { %p672_p8 = scmp.ne.s32.totalorder %s994_s11, %s671_s14  ;;  %p676_p4 = scmp.lt.u32.totalorder %s994_s11, %s1046_s5 }
 0x1c4   : > { %p677_p11 = scmp.lt.u32.totalorder %s675_s27, %s671_s14  ;;  %p679_p3 = scmp.lt.u32.totalorder %s671_s14, %s994_s11 }
 0x1c5   : > { %p673_p10 = pnand %p672_p8, %p865_p12 }
 0x1c6   : > { %p678_p13 = por %p677_p11, %p676_p4 }
 0x1c7   : > { %p674_p0 = pneg %p673_p10 }
 0x1c8   : > { %p680_p7 = por %p679_p3, %p678_p13 }
 0x1ca   : > { %p681_p9 = pnand %p680_p7, %p674_p0 }
 0x1cc   : > { %684 = shalt.err (!%p681_p9)
}
 0x1cd   : > { %s739_s8 = smov 128   ;;  %s740_s23 = smov 8  }
 0x1ce   : > { %507 = dma.vmem_to_hbm [thread:$0]  (%p865_p12), %s996_s16, 256, %s994_s11, %s356_s28, %s739_s8, %s739_s8, %s740_s23  }
 0x1cf PF: > { %s384_s13 = sand.u32 1, %s719_s18   ;;  %p1074_p1 = scmp.ne.s32.totalorder %s1059_s25, 0 }
 0x1d0   : > { %p1075_p5 = scmp.ge.s32.totalorder %s731_s21, 2  ;;  %s385_s6 = scalar_lea.sflag [#allocation4], %s384_s13 }
 0x1d2   : > { %p521_p2 = pnand %p1075_p5, %p1074_p1 }
 0x1d4   : > { %714 = dma.done.wait (!%p521_p2), %s385_s6, 256  }
 0x1d5   : > { %716 = vsyncadd (!%p521_p2), %s385_s6, 4294967040  ;;  %s1076_s29 = sld [smem:[#allocation13_spill]]  ;;  %s1077_s20 = sld [smem:[#allocation14_spill]] }
 0x1d6   : > { %p21_p6 = scmp.ge.s32.totalorder %s827_s30, 4   ;;  %s1078_s18 = smov %s723_s19 }
 0x1d7   : > { %s1080_s21 = smov %s827_s30 }
 0x1d8   :  { %23 = sbr.rel (!%p21_p6) target bundleno = 10 (0xa), region = 102 }
 0x1db   : > { %s1079_s19 = smov %s1076_s29 }
 0x1df   :  { %390 = vsyncpa [#allocation3], 1 }
 0x1e0   :  { %392 = vsyncpa [#allocation3 + $0x1], 1 }
 0x1e1   :  { %393 = vsyncpa [#allocation6], 1 }
 0x1e2   :  { %395 = vsyncpa [#allocation6 + $0x1], 1 }
 0x1e3   :  { %396 = vsyncpa [#allocation4], 1 }
 0x1e4   :  { %398 = vsyncpa [#allocation4 + $0x1], 1 }

</bundles_post_ra>
